<compile_context>
chip_gen: v5e
topology: v5e:2x2
jax: 0.10.0
libtpu: 0.0.40
codegen_flags: <defaults>
</compile_context>

<pallas_src>
import functools

import jax
import jax.numpy as jnp
from jax.experimental import pallas as pl
from jax.experimental.pallas import tpu as pltpu


def target_encoder_kernel(xt_ref, xc_ref, w1_ref, b1_ref, w2_ref, b2_ref,
                          out_ref, *, goal_diff, tile_b):
    # Fuse the two encoder passes: stack target/current tiles along the batch
    # (sublane) axis and run each Linear once on the doubled batch.
    x = jnp.concatenate([xt_ref[...], xc_ref[...]], axis=0)        # (2*TB, obs_dim)

    h1 = jnp.tanh(
        jnp.dot(x, w1_ref[...], preferred_element_type=jnp.float32) + b1_ref[...])
    h = (jnp.dot(h1, w2_ref[...], preferred_element_type=jnp.float32)
         + b2_ref[...])                                            # (2*TB, goal_dim)

    h_goal_pre = h[:tile_b]                                        # enc(obs_target)
    h_current = h[tile_b:]                                         # enc(obs_current)
    h_goal = h_goal_pre - h_current if goal_diff else h_goal_pre

    # Single lane-dense output slab: [h_goal | h_current | snapshot(pre-diff)].
    out_ref[...] = jnp.concatenate([h_goal, h_current, h_goal_pre], axis=-1)


def target_encoder_forward(obs_target, obs_current, params, *, goal_diff,
                           tile_b=None):
    """Returns ((h_goal, h_current), target_emb_snapshot)."""
    B, obs_dim = obs_target.shape
    hid = params["w1"].shape[1]
    G = params["w2"].shape[1]

    if tile_b is None:
        # Keep tiles modest so double-buffered input tiles + resident weights +
        # the concatenated output tile fit v7x's 64 MiB VMEM as well as v5e/v6e.
        tile_b = min(B, 128)
    assert B % tile_b == 0 and tile_b % 8 == 0, "tile_b must be a sublane multiple"
    grid = (B // tile_b,)

    kernel = functools.partial(target_encoder_kernel,
                               goal_diff=goal_diff, tile_b=tile_b)

    out = pl.pallas_call(
        kernel,
        out_shape=jax.ShapeDtypeStruct((B, 3 * G), jnp.float32),
        grid=grid,
        in_specs=[
            pl.BlockSpec((tile_b, obs_dim), lambda i: (i, 0)),     # obs_target tile
            pl.BlockSpec((tile_b, obs_dim), lambda i: (i, 0)),     # obs_current tile
            pl.BlockSpec((obs_dim, hid), lambda i: (0, 0)),        # w1 (resident)
            pl.BlockSpec((1, hid), lambda i: (0, 0)),              # b1 (resident)
            pl.BlockSpec((hid, G), lambda i: (0, 0)),              # w2 (resident)
            pl.BlockSpec((1, G), lambda i: (0, 0)),                # b2 (resident)
        ],
        out_specs=pl.BlockSpec((tile_b, 3 * G), lambda i: (i, 0)),
        compiler_params=pltpu.CompilerParams(
            dimension_semantics=("parallel",)),                    # megacore-shardable
    )(obs_target, obs_current,
      params["w1"], params["b1"], params["w2"], params["b2"])

    h_goal = out[:, :G]
    h_current = out[:, G:2 * G]
    snapshot = out[:, 2 * G:]          # pre-diff h_goal (== self.target_emb_snapshot)
    return (h_goal, h_current), snapshot


def _linear_params(key, in_dim, out_dim):
    # Deterministic init mimicking torch.nn.Linear default: U(-1/sqrt(in), 1/sqrt(in)).
    kw, kb = jax.random.split(key)
    bound = 1.0 / jnp.sqrt(jnp.float32(in_dim))
    w = jax.random.uniform(kw, (in_dim, out_dim), jnp.float32, -bound, bound)
    b = jax.random.uniform(kb, (1, out_dim), jnp.float32, -bound, bound)
    return w, b


def _reference_forward(obs_target, obs_current, params, goal_diff):
    def enc(x):
        h1 = jnp.tanh(x @ params["w1"] + params["b1"])
        return h1 @ params["w2"] + params["b2"]

    h_goal = enc(obs_target)
    h_current = enc(obs_current)
    snapshot = h_goal
    if goal_diff:
        h_goal = h_goal - h_current
    return (h_goal, h_current), snapshot


if __name__ == "__main__":
    batch = 16          # 2 batch tiles of 8 -> exercises the grid + pipelining
    obs_dim = 16
    hid_size = 32
    goal_dim = 8

    key = jax.random.PRNGKey(0)
    keys = jax.random.split(key, 4)

    params = {}
    params["w1"], params["b1"] = _linear_params(keys[0], obs_dim, hid_size)   # enc[0]
    params["w2"], params["b2"] = _linear_params(keys[1], hid_size, goal_dim)  # enc[2]

    obs_target = jax.random.normal(keys[2], (batch, obs_dim), jnp.float32)
    obs_current = jax.random.normal(keys[3], (batch, obs_dim), jnp.float32)

    for goal_diff in (True, False):
        (h_goal, h_current), snap = target_encoder_forward(
            obs_target, obs_current, params, goal_diff=goal_diff, tile_b=8)
        jax.block_until_ready(h_goal)
        jax.block_until_ready(h_current)
        jax.block_until_ready(snap)

        (ref_goal, ref_current), ref_snap = _reference_forward(
            obs_target, obs_current, params, goal_diff)
        assert jnp.allclose(h_goal, ref_goal, atol=1e-5, rtol=1e-5)
        assert jnp.allclose(h_current, ref_current, atol=1e-5, rtol=1e-5)
        assert jnp.allclose(snap, ref_snap, atol=1e-5, rtol=1e-5)

    print("KERNEL_OK")
</pallas_src>

<mosaic_0001>
module attributes {stable_mosaic.version = 11 : i64} {
  func.func @target_encoder_kernel(%arg0: i32, %arg1: memref<8x16xf32, #tpu.memory_space<vmem>>, %arg2: memref<8x16xf32, #tpu.memory_space<vmem>>, %arg3: memref<16x32xf32, #tpu.memory_space<vmem>>, %arg4: memref<1x32xf32, #tpu.memory_space<vmem>>, %arg5: memref<32x8xf32, #tpu.memory_space<vmem>>, %arg6: memref<1x8xf32, #tpu.memory_space<vmem>>, %arg7: memref<8x24xf32, #tpu.memory_space<vmem>>) attributes {dimension_semantics = [#tpu.dimension_semantics<parallel>], iteration_bounds = array<i64: 2>, scalar_prefetch = 0 : i64, scratch_operands = 0 : i64, tpu.core_type = #tpu.core_type<tc>, window_params = [{transform_indices = @transform_0, window_bounds = array<i64: 8, 16>}, {transform_indices = @transform_1, window_bounds = array<i64: 8, 16>}, {pipeline_mode = #tpu.pipeline_mode<synchronous>, transform_indices = @transform_2, window_bounds = array<i64: 16, 32>}, {pipeline_mode = #tpu.pipeline_mode<synchronous>, transform_indices = @transform_3, window_bounds = array<i64: 1, 32>}, {pipeline_mode = #tpu.pipeline_mode<synchronous>, transform_indices = @transform_4, window_bounds = array<i64: 32, 8>}, {pipeline_mode = #tpu.pipeline_mode<synchronous>, transform_indices = @transform_5, window_bounds = array<i64: 1, 8>}, {transform_indices = @transform_6, window_bounds = array<i64: 8, 24>}]} {
    %c0 = arith.constant 0 : index
    %c0_0 = arith.constant 0 : index
    %0 = vector.load %arg1[%c0, %c0_0] : memref<8x16xf32, #tpu.memory_space<vmem>>, vector<8x16xf32>
    %c0_1 = arith.constant 0 : index
    %c0_2 = arith.constant 0 : index
    %1 = vector.load %arg2[%c0_1, %c0_2] : memref<8x16xf32, #tpu.memory_space<vmem>>, vector<8x16xf32>
    %2 = tpu.concatenate %0, %1 in 0 : vector<8x16xf32>, vector<8x16xf32> -> vector<16x16xf32>
    %c0_3 = arith.constant 0 : index
    %c0_4 = arith.constant 0 : index
    %3 = vector.load %arg3[%c0_3, %c0_4] : memref<16x32xf32, #tpu.memory_space<vmem>>, vector<16x32xf32>
    %cst = arith.constant dense<0.000000e+00> : vector<16x32xf32>
    %4 = tpu.matmul %2, %3, %cst {dimension_numbers = #tpu.dot_dimension_numbers<[1], [0], [0], [1], [0, 0, 1, 1], [], []>} : vector<16x16xf32>, vector<16x32xf32>, vector<16x32xf32> -> vector<16x32xf32>
    %c0_5 = arith.constant 0 : index
    %c0_6 = arith.constant 0 : index
    %5 = vector.load %arg4[%c0_5, %c0_6] : memref<1x32xf32, #tpu.memory_space<vmem>>, vector<1x32xf32>
    %6 = vector.broadcast %5 : vector<1x32xf32> to vector<16x32xf32>
    %7 = arith.addf %4, %6 : vector<16x32xf32>
    %8 = math.tanh %7 : vector<16x32xf32>
    %c0_7 = arith.constant 0 : index
    %c0_8 = arith.constant 0 : index
    %9 = vector.load %arg5[%c0_7, %c0_8] : memref<32x8xf32, #tpu.memory_space<vmem>>, vector<32x8xf32>
    %cst_9 = arith.constant dense<0.000000e+00> : vector<16x8xf32>
    %10 = tpu.matmul %8, %9, %cst_9 {dimension_numbers = #tpu.dot_dimension_numbers<[1], [0], [0], [1], [0, 0, 1, 1], [], []>} : vector<16x32xf32>, vector<32x8xf32>, vector<16x8xf32> -> vector<16x8xf32>
    %c0_10 = arith.constant 0 : index
    %c0_11 = arith.constant 0 : index
    %11 = vector.load %arg6[%c0_10, %c0_11] : memref<1x8xf32, #tpu.memory_space<vmem>>, vector<1x8xf32>
    %12 = vector.broadcast %11 : vector<1x8xf32> to vector<16x8xf32>
    %13 = arith.addf %10, %12 : vector<16x8xf32>
    %14 = vector.extract_strided_slice %13 {offsets = [0, 0], sizes = [8, 8], strides = [1, 1]} : vector<16x8xf32> to vector<8x8xf32>
    %15 = vector.extract_strided_slice %13 {offsets = [8, 0], sizes = [8, 8], strides = [1, 1]} : vector<16x8xf32> to vector<8x8xf32>
    %16 = arith.subf %14, %15 : vector<8x8xf32>
    %17 = tpu.concatenate %16, %15, %14 in 1 : vector<8x8xf32>, vector<8x8xf32>, vector<8x8xf32> -> vector<8x24xf32>
    %c0_12 = arith.constant 0 : index
    %c0_13 = arith.constant 0 : index
    %18 = vector.load %arg7[%c0_12, %c0_13] : memref<8x24xf32, #tpu.memory_space<vmem>>, vector<8x24xf32>
    tpu.vector_store %arg7[%c0_12, %c0_13], %17 {strides = array<i32>} : memref<8x24xf32, #tpu.memory_space<vmem>>, vector<8x24xf32>,
    return
  }
  func.func @transform_0(%arg0: i32) -> (i32, i32) {
    %c0_i32 = arith.constant 0 : i32
    %c0_i32_0 = arith.constant 0 : i32
    return %arg0, %c0_i32 : i32, i32
  }
  func.func @transform_1(%arg0: i32) -> (i32, i32) {
    %c0_i32 = arith.constant 0 : i32
    %c0_i32_0 = arith.constant 0 : i32
    return %arg0, %c0_i32 : i32, i32
  }
  func.func @transform_2(%arg0: i32) -> (i32, i32) {
    %c0_i32 = arith.constant 0 : i32
    %c0_i32_0 = arith.constant 0 : i32
    %c0_i32_1 = arith.constant 0 : i32
    return %c0_i32, %c0_i32_0 : i32, i32
  }
  func.func @transform_3(%arg0: i32) -> (i32, i32) {
    %c0_i32 = arith.constant 0 : i32
    %c0_i32_0 = arith.constant 0 : i32
    %c0_i32_1 = arith.constant 0 : i32
    return %c0_i32, %c0_i32_0 : i32, i32
  }
  func.func @transform_4(%arg0: i32) -> (i32, i32) {
    %c0_i32 = arith.constant 0 : i32
    %c0_i32_0 = arith.constant 0 : i32
    %c0_i32_1 = arith.constant 0 : i32
    return %c0_i32, %c0_i32_0 : i32, i32
  }
  func.func @transform_5(%arg0: i32) -> (i32, i32) {
    %c0_i32 = arith.constant 0 : i32
    %c0_i32_0 = arith.constant 0 : i32
    %c0_i32_1 = arith.constant 0 : i32
    return %c0_i32, %c0_i32_0 : i32, i32
  }
  func.func @transform_6(%arg0: i32) -> (i32, i32) {
    %c0_i32 = arith.constant 0 : i32
    %c0_i32_0 = arith.constant 0 : i32
    return %arg0, %c0_i32 : i32, i32
  }
}

</mosaic_0001>

<bundles_post_ra>
// kernel: tpu_custom_call.1
= control target key start
LH: loop header
LB: loop body
LE: loop exit
PB: predicated region body
PF: predicated region fallthrough
CT: control target
= control target key end

     0   :  { %11 = vsyncpa [#allocation3], 0  ;;  %s812_s0 = inlined_call_operand.vmem [shape: f32[16,16], index: 0, kind: input, shape index: {}]   ;;  %s813_s1 = inlined_call_operand.vmem [shape: f32[16,16], index: 1, kind: input, shape index: {}]   ;;  %s814_s2 = inlined_call_operand.hbm [shape: f32[16,32], index: 2, kind: input, shape index: {}]   ;;  %s815_s3 = inlined_call_operand.vmem [shape: f32[1,32], index: 3, kind: input, shape index: {}]   ;;  %s816_s4 = inlined_call_operand.vmem [shape: f32[32,8], index: 4, kind: input, shape index: {}]   ;;  %s817_s5 = inlined_call_operand.vmem [shape: f32[1,8], index: 5, kind: input, shape index: {}]   ;;  %s818_s6 = inlined_call_operand.hbm [shape: f32[16,24], index: 6, kind: output, shape index: {}]  }
   0x1   :  { %12 = vsyncpa [#allocation4], 0 }
   0x2   :  { %14 = vsyncpa [#allocation4 + $0x1], 0  ;;  %s693_s21 = smov 0   ;;  %s695_s22 = smov 0  }
   0x3   :  { %s697_s23 = smov 0   ;;  %s699_s24 = smov 0  }
   0x4 LB: > { %s714_s25 = sadd.s32 4294967295, %s651_s24   ;;  %s472_s26 = sadd.s32 4294967294, %s651_s24   ;;  %s651_s24 = sphi %s699_s24, %s824_s24   ;;  %s647_s23 = sphi %s697_s23, %s823_s23   ;;  %s643_s22 = sphi %s695_s22, %s822_s22   ;;  %s639_s21 = sphi %s693_s21, %s821_s21  }
   0x5   : > { %s718_s27 = sadd.s32 1, %s651_s24   ;;  %s163_s28 = sadd.s32 1, %s647_s23 }
   0x6   : > { %s160_s29 = ssub.s32 %s651_s24, %s718_s27  ;;  %p173_p0 = scmp.ne.s32.totalorder %s647_s23, %s643_s22 }
   0x7   : > { %p161_p1 = scmp.eq.s32.totalorder %s160_s29, 0  ;;  %p174_p2 = scmp.eq.s32.totalorder %s714_s25, 1 }
   0x8   : > { %p179_p3 = scmp.ne.s32.totalorder %s643_s22, %s639_s21  ;;  %p180_p4 = scmp.eq.s32.totalorder %s472_s26, 1 }
   0x9   : > { %s729_s30 = scalar_select %p161_p1, %s647_s23, %s163_s28  }
   0xa   : > { %p731_p5 = por %p174_p2, %p173_p0  ;;  %p735_p6 = por %p180_p4, %p179_p3 }
   0xb   : > { %p473_p7 = scmp.ge.s32.totalorder %s651_s24, 1  ;;  %p187_p8 = scmp.lt.s32.totalorder %s651_s24, 3 }
   0xc   : > { %p509_p9 = scmp.eq.s32.totalorder %s714_s25, 0  ;;  %s198_s11 = sshll.u32 %s814_s2, 4  ;;  %s199_s11 = int_to_ptr.hbm [resolvable:$true] %s198_s11 }
   0xd   : > { %p188_p10 = pnand %p473_p7, %p187_p8  ;;  %s653_s12 = smov [#allocation2]  }
   0xe   : > { %s200_s13 = sshll.u32 %s653_s12, 4  ;;  %s654_s14 = smov 128   ;;  %s201_s13 = int_to_ptr.vmem [resolvable:$true] %s200_s13 }
   0xf   : > { %p501_p11 = pneg %p188_p10  ;;  %s655_s15 = smov 8  }
  0x10   : > { %239 = sbr.rel (%p188_p10) target bundleno = 431 (0x1af), region = 44 }
  0x11   : > { %p502_p12 = pnand %p509_p9, %p501_p11 }
  0x13   : > { %504 = dma.hbm_to_vmem [thread:$0]  (!%p502_p12), %s199_s11, 256, %s201_s13, [#allocation3], %s654_s14, %s654_s14, %s655_s15  }
  0x15   : > { %630 = dma.done.wait (%p509_p9), [#allocation3], 256  }
  0x16   : > { %632 = vsyncadd (%p509_p9), [#allocation3], 4294967040  ;;  %p273_p13 = scmp.lt.s32.totalorder %s714_s25, 1  ;;  %v284_v0 = vld [vmem:[#allocation2 + $0x8] sm:$0xff]  ;;  %v283_v1 = vld [vmem:[#allocation2] sm:$0xff]  ;;  %vm289_vm0 = vcmask 130048  }
  0x17   : > { %489 = vmatpush.msra.mxu3 %v284_v0  ;;  %310 = vmatpush.msra.mxu0 %v284_v0  ;;  %v324_v4 = vld [vmem:[%s816_s4 + $0x18] sm:$0xff]  ;;  %v323_v5 = vld [vmem:[%s816_s4 + $0x10] sm:$0xff]  ;;  %v322_v6 = vld [vmem:[%s816_s4 + $0x8] sm:$0xff]  ;;  %vm329_vm1 = vcmask 261120   ;;  %s656_s26 = smov 8   ;;  %s657_s28 = smov 16  }
  0x18   : > { %s274_s16 = scalar_select %p273_p13, %s714_s25, 1  ;;  %491 = vmatpush.msra.mxu2 %v324_v4  ;;  %348 = vmatpush.msra.mxu1 %v324_v4  ;;  %v321_v7 = vld [vmem:[%s816_s4] sm:$0xff]  ;;  %vm368_vm2 = vcmask 64512   ;;  %vm371_vm3 = vcmask 195584  }
  0x19   : > { %490 = vmatpush.msra.mxu3 %v283_v1  ;;  %311 = vmatpush.msra.mxu0 %v283_v1  ;;  %v549_v8 = vld [vmem:[%s815_s3] ss:$0 sm:$0xff]  ;;  %s486_s10 = sshll.u32 %s714_s25, 3 }
  0x1a   : > { %s479_s17 = sshll.u32 %s274_s16, 3  ;;  %492 = vmatpush.msra.mxu2 %v323_v5  ;;  %349 = vmatpush.msra.mxu1 %v323_v5  ;;  %v550_v15 = vld [vmem:[%s817_s5] ss:$0 sm:$0xff]  ;;  %s384_s13 = scalar_lea.hbm %s818_s6, %s486_s10 }
  0x1b   : > { %s280_s20 = scalar_lea.vmem %s813_s1, %s479_s17  ;;  %s276_s29 = scalar_lea.vmem %s812_s0, %s479_s17 }
  0x1c   : > { %v282_v2 = vld [vmem:[%s280_s20] sm:$0xff]  ;;  %493 = vmatpush.msra.mxu2 %v322_v6  ;;  %350 = vmatpush.msra.mxu1 %v322_v6  ;;  %s388_s16 = sshll.u32 %s384_s13, 4  ;;  %s389_s16 = int_to_ptr.hbm [resolvable:$true] %s388_s16 }
  0x1d   : > { %v281_v3 = vld [vmem:[%s276_s29] sm:$0xff]  ;;  %482 = vmatmul.msk.f32.vlgmr.msra.gmra.mxu3 %vm289_vm0, %v282_v2  ;;  %s270_s29 = sand.u32 1, %s643_s22   ;;  %s599_s25 = sshra.s32 %s389_s16, 4  ;;  %s600_s25 = int_to_ptr.hbm [resolvable:$true] %s599_s25 }
  0x1e   : > { %481 = vmatmul.msk.f32.vlgmr.msra.gmra.mxu0 %vm289_vm0, %v281_v3  ;;  %494 = vmatpush.msra.mxu2 %v321_v7  ;;  %s478_s9 = sshll.u32 %s270_s29, 3  ;;  %s374_s17 = scalar_lea.sflag [#allocation4], %s270_s29 }
  0x1f   : > { %351 = vmatpush.msra.mxu1 %v321_v7  ;;  %s272_s14 = scalar_lea.vmem [#allocation5], %s478_s9  ;;  %s601_s18 = scalar_lea.hbm %s600_s25, 8 }
  0x20   : > { %s386_s15 = sshll.u32 %s272_s14, 4  ;;  %p602_p0 = scmp.ne.s32.totalorder %s600_s25, %s601_s18  ;;  %s387_s15 = int_to_ptr.vmem [resolvable:$true] %s386_s15 }
  0x21   : > { %p606_p3 = scmp.lt.s32.totalorder %s600_s25, %s818_s6 }
  0x22   : > { %p603_p1 = pnand %p602_p0, %p731_p5 }
  0x24   : > { %p604_p2 = pneg %p603_p1 }
  0x9b   : > { %v313_v9 = vpop.f32.mrf.mxu0 }
  0x9c   : > { %v314_v10 = vadd.f32 %v549_v8, %v313_v9 }
  0x9e   : > { %551 = vtanh.f32 %v314_v10 }
  0xa0   : > { %v316_v11 = vpop.f32.mrf.mxu3 }
  0xa1   : > { %v317_v12 = vadd.f32 %v549_v8, %v316_v11 }
  0xa3   : > { %553 = vtanh.f32 %v317_v12 }
  0xa4   : > { %v552_v13 = vpop.eup %551 }
  0xa5   : > { %483 = vmatmul.msk.f32.vlgmr.msra.gmra.mxu1 %vm329_vm1, %v552_v13 }
  0xa9   : > { %v554_v14 = vpop.eup %553 }
  0xaa   : > { %484 = vmatmul.msk.f32.vlgmr.msra.gmra.mxu2 %vm329_vm1, %v554_v14 }
 0x122   : > { %v353_v16 = vpop.f32.mrf.mxu1 }
 0x123   : > { %v354_v17 = vadd.f32 %v550_v15, %v353_v16 }
 0x12d   : > { %v356_v18 = vpop.f32.mrf.mxu2 }
 0x12e   : > { %v357_v19 = vadd.f32 %v550_v15, %v356_v18 }
 0x130   : > { %v359_v20 = vsub.f32 %v354_v17, %v357_v19  ;;  %361 = vrot.lane.b32.xlu0 %v357_v19, %s656_s26  ;;  %s605_s26 = scalar_lea.hbm %s818_s6, 16 }
 0x131   : > { %p607_p4 = scmp.lt.s32.totalorder %s605_s26, %s601_s18 }
 0x133   : > { %p608_p7 = por %p607_p4, %p606_p3 }
 0x135   : > { %p609_p8 = pnand %p608_p7, %p604_p2 }
 0x138   : > { %365 = vrot.lane.b32.xlu0 %v354_v17, %s657_s28 }
 0x1a2   : > { %v362_v21 = vpop.permute.xlu0 %361 }
 0x1a3   : > { %v369_v22 = vsel %vm368_vm2, %v359_v20, %v362_v21 }
 0x1aa   : > { %v366_v23 = vpop.permute.xlu0 %365 }
 0x1ab   : > { %v370_v24 = vsel %vm289_vm0, %v369_v22, %v366_v23 }
 0x1ac   : > { %372 = vst.msk [vmem:[%s272_s14] sm:$0xff] %vm371_vm3, %v370_v24 }
 0x1ad   : > { %612 = shalt.err (!%p609_p8)
}
 0x1ae   : > { %499 = dma.vmem_to_hbm [thread:$0]  (%p731_p5), %s387_s15, 128, %s389_s16, %s374_s17  }
 0x1af PF: > { %p511_p9 = scmp.ge.s32.totalorder %s651_s24, 2  ;;  %s400_s29 = sand.u32 1, %s639_s21  }
 0x1b0   : > { %s401_s10 = scalar_lea.sflag [#allocation4], %s400_s29 }
 0x1b1   : > { %p506_p10 = pnand %p511_p9, %p735_p6 }
 0x1b3   : > { %p507_p11 = pneg %p506_p10 }
 0x1b5   : > { %634 = dma.done.wait (%p507_p11), %s401_s10, 128  }
 0x1b6   : > { %636 = vsyncadd (%p507_p11), %s401_s10, 4294967168  ;;  %p17_p12 = scmp.ge.s32.totalorder %s718_s27, 4   ;;  %s821_s21 = smov %s643_s22 }
 0x1b7   : > { %s822_s22 = smov %s647_s23  ;;  %s823_s23 = smov %s729_s30 }
 0x1b8   : > { %s824_s24 = smov %s718_s27  ;;  %19 = sbr.rel (!%p17_p12) target bundleno = 4 (0x4), region = 87 }
 0x1bd   :  { %407 = vsyncpa [#allocation3], 1 }
 0x1be   :  { %409 = vsyncpa [#allocation3 + $0x1], 1 }
 0x1bf   :  { %410 = vsyncpa [#allocation4], 1 }
 0x1c0   :  { %412 = vsyncpa [#allocation4 + $0x1], 1 }

</bundles_post_ra>
